<compile_context>
chip_gen: v7x
topology: tpu7x:2x2x1
jax: 0.10.0
libtpu: 0.0.40
codegen_flags: <defaults>
</compile_context>

<pallas_src>
import jax
import jax.numpy as jnp
from jax.experimental import pallas as pl
from jax.experimental.pallas import tpu as pltpu

# ----------------------------- configuration -------------------------------
E = 32          # emb_dim
META = 16       # meta_dim
BATCH = 8       # sublane-full batch
SEQ = 8         # sequence length

_VMEM = pl.BlockSpec(memory_space=pltpu.MemorySpace.VMEM)


# ------------------------------ fused kernel --------------------------------
def _metanet_kernel(emb_ref, seq_ref, w1_ref, b1_ref, wout_ref,
                    wd1_ref, bd1_ref, wd2_ref, bd2_ref, out_ref):
    x = emb_ref[...]                                      # [B, L, E] f32
    B, L, Edim = x.shape

    # event_K: Linear(E,E)+ReLU on all B*L rows at once (single MXU matmul),
    # then Linear(E,1,bias=False) as a VPU multiply + lane reduce.
    x2 = x.reshape(B * L, Edim)                           # merge leading dims (layout-safe)
    h = jnp.maximum(
        jnp.dot(x2, w1_ref[...], preferred_element_type=jnp.float32)
        + b1_ref[...], 0.0)                               # [B*L, E]
    h3 = h.reshape(B, L, Edim)                            # split leading dim (layout-safe)
    score = jnp.sum(h3 * wout_ref[...], axis=-1)          # [B, L]

    # masked softmax over the sequence dimension (dim=1)
    mask = (seq_ref[...] == 0).astype(jnp.float32)        # [B, L]
    t = score - mask * 1e8
    m = jnp.max(t, axis=1, keepdims=True)
    ex = jnp.exp(t - m)
    att = ex / jnp.sum(ex, axis=1, keepdims=True)         # [B, L]

    # attention-weighted pooling: broadcast multiply + sublane reduce
    his = jnp.sum(att[:, :, None] * x, axis=1)            # [B, E]

    # decoder: Linear(E, META)+ReLU, Linear(META, E*E)
    z = jnp.maximum(
        jnp.dot(his, wd1_ref[...], preferred_element_type=jnp.float32)
        + bd1_ref[...], 0.0)                              # [B, META]
    out_ref[...] = (
        jnp.dot(z, wd2_ref[...], preferred_element_type=jnp.float32)
        + bd2_ref[...])                                   # [B, E*E] (lane-dense)


def metanet_forward(params, emb_fea, seq_index):
    b = emb_fea.shape[0]
    return pl.pallas_call(
        _metanet_kernel,
        in_specs=[_VMEM] * 9,
        out_specs=_VMEM,
        out_shape=jax.ShapeDtypeStruct((b, E * E), jnp.float32),
    )(emb_fea, seq_index,
      params['w1'], params['b1'], params['wout'],
      params['wd1'], params['bd1'], params['wd2'], params['bd2'])


# ------------------------------ parameter init ------------------------------
def init_params(key):
    ks = iter(jax.random.split(key, 16))

    def nrm(shape, scale=0.1):
        return (scale * jax.random.normal(next(ks), shape)).astype(jnp.float32)

    # Weights stored pre-transposed ([in, out]) relative to torch.nn.Linear.
    return {
        'w1': nrm((E, E)), 'b1': nrm((1, E)),
        'wout': nrm((1, E)),                       # Linear(E, 1, bias=False) row
        'wd1': nrm((E, META)), 'bd1': nrm((1, META)),
        'wd2': nrm((META, E * E)), 'bd2': nrm((1, E * E)),
    }


# ------------------------------ pure-JAX reference ---------------------------
def metanet_reference(params, emb_fea, seq_index):
    hp = jax.lax.Precision.HIGHEST
    mask = (seq_index == 0).astype(jnp.float32)
    h = jax.nn.relu(
        jnp.einsum('ble,ef->blf', emb_fea, params['w1'], precision=hp)
        + params['b1'])
    score = jnp.sum(h * params['wout'], axis=-1)                    # event_K
    t = score - mask * 1e8
    att = jax.nn.softmax(t, axis=1)
    his = jnp.sum(att[:, :, None] * emb_fea, axis=1)
    z = jax.nn.relu(jnp.dot(his, params['wd1'], precision=hp) + params['bd1'])
    return jnp.dot(z, params['wd2'], precision=hp) + params['bd2']  # squeeze(1) is a no-op


# --------------------------------- main --------------------------------------
if __name__ == "__main__":
    key = jax.random.PRNGKey(0)
    kp, ke, ksq = jax.random.split(key, 3)

    params = init_params(kp)
    emb_fea = jax.random.normal(ke, (BATCH, SEQ, E), dtype=jnp.float32)
    # id 0 acts as padding (mask = seq == 0), same as the PyTorch module
    seq_index = jax.random.randint(ksq, (BATCH, SEQ), 0, 20, dtype=jnp.int32)

    out = jax.jit(metanet_forward)(params, emb_fea, seq_index)
    jax.block_until_ready(out)

    ref = metanet_reference(params, emb_fea, seq_index)
    assert out.shape == (BATCH, E * E)
    assert bool(jnp.all(jnp.isfinite(out)))
    assert bool(jnp.allclose(out, ref, atol=1e-3, rtol=1e-3))
    print("KERNEL_OK")
</pallas_src>

<mosaic_0001>
module attributes {stable_mosaic.version = 11 : i64} {
  func.func @_metanet_kernel(%arg0: memref<8x8x32xf32, #tpu.memory_space<vmem>>, %arg1: memref<8x8xi32, #tpu.memory_space<vmem>>, %arg2: memref<32x32xf32, #tpu.memory_space<vmem>>, %arg3: memref<1x32xf32, #tpu.memory_space<vmem>>, %arg4: memref<1x32xf32, #tpu.memory_space<vmem>>, %arg5: memref<32x16xf32, #tpu.memory_space<vmem>>, %arg6: memref<1x16xf32, #tpu.memory_space<vmem>>, %arg7: memref<16x1024xf32, #tpu.memory_space<vmem>>, %arg8: memref<1x1024xf32, #tpu.memory_space<vmem>>, %arg9: memref<8x1024xf32, #tpu.memory_space<vmem>>) attributes {dimension_semantics = [], scalar_prefetch = 0 : i64, scratch_operands = 0 : i64, tpu.core_type = #tpu.core_type<tc>} {
    %c0 = arith.constant 0 : index
    %c0_0 = arith.constant 0 : index
    %c0_1 = arith.constant 0 : index
    %0 = vector.load %arg0[%c0, %c0_0, %c0_1] : memref<8x8x32xf32, #tpu.memory_space<vmem>>, vector<8x8x32xf32>
    %1 = vector.shape_cast %0 : vector<8x8x32xf32> to vector<64x32xf32>
    %c0_2 = arith.constant 0 : index
    %c0_3 = arith.constant 0 : index
    %2 = vector.load %arg2[%c0_2, %c0_3] : memref<32x32xf32, #tpu.memory_space<vmem>>, vector<32x32xf32>
    %cst = arith.constant dense<0.000000e+00> : vector<64x32xf32>
    %3 = tpu.matmul %1, %2, %cst {dimension_numbers = #tpu.dot_dimension_numbers<[1], [0], [0], [1], [0, 0, 1, 1], [], []>} : vector<64x32xf32>, vector<32x32xf32>, vector<64x32xf32> -> vector<64x32xf32>
    %c0_4 = arith.constant 0 : index
    %c0_5 = arith.constant 0 : index
    %4 = vector.load %arg3[%c0_4, %c0_5] : memref<1x32xf32, #tpu.memory_space<vmem>>, vector<1x32xf32>
    %5 = vector.broadcast %4 : vector<1x32xf32> to vector<64x32xf32>
    %6 = arith.addf %3, %5 : vector<64x32xf32>
    %cst_6 = arith.constant 0.000000e+00 : f32
    %7 = vector.broadcast %cst_6 : f32 to vector<64x32xf32>
    %8 = arith.maximumf %6, %7 : vector<64x32xf32>
    %9 = vector.shape_cast %8 : vector<64x32xf32> to vector<8x8x32xf32>
    %c0_7 = arith.constant 0 : index
    %c0_8 = arith.constant 0 : index
    %10 = vector.load %arg4[%c0_7, %c0_8] : memref<1x32xf32, #tpu.memory_space<vmem>>, vector<1x32xf32>
    %11 = vector.shape_cast %10 : vector<1x32xf32> to vector<1x1x32xf32>
    %12 = vector.broadcast %11 : vector<1x1x32xf32> to vector<8x8x32xf32>
    %13 = arith.mulf %9, %12 : vector<8x8x32xf32>
    %cst_9 = arith.constant dense<0.000000e+00> : vector<8x8xf32>
    %14 = vector.multi_reduction <add>, %13, %cst_9 [2] : vector<8x8x32xf32> to vector<8x8xf32>
    %c0_10 = arith.constant 0 : index
    %c0_11 = arith.constant 0 : index
    %15 = vector.load %arg1[%c0_10, %c0_11] : memref<8x8xi32, #tpu.memory_space<vmem>>, vector<8x8xi32>
    %c0_i32 = arith.constant 0 : i32
    %16 = vector.broadcast %c0_i32 : i32 to vector<8x8xi32>
    %17 = arith.cmpi eq, %15, %16 : vector<8x8xi32>
    %18 = arith.extui %17 : vector<8x8xi1> to vector<8x8xi32>
    %19 = arith.sitofp %18 : vector<8x8xi32> to vector<8x8xf32>
    %cst_12 = arith.constant 1.000000e+08 : f32
    %20 = vector.broadcast %cst_12 : f32 to vector<8x8xf32>
    %21 = arith.mulf %19, %20 : vector<8x8xf32>
    %22 = arith.subf %14, %21 : vector<8x8xf32>
    %cst_13 = arith.constant dense<0xFF800000> : vector<8xf32>
    %23 = vector.multi_reduction <maximumf>, %22, %cst_13 [1] : vector<8x8xf32> to vector<8xf32>
    %24 = vector.shape_cast %23 : vector<8xf32> to vector<8x1xf32>
    %25 = vector.broadcast %24 : vector<8x1xf32> to vector<8x8xf32>
    %26 = arith.subf %22, %25 : vector<8x8xf32>
    %27 = math.exp %26 : vector<8x8xf32>
    %cst_14 = arith.constant dense<0.000000e+00> : vector<8xf32>
    %28 = vector.multi_reduction <add>, %27, %cst_14 [1] : vector<8x8xf32> to vector<8xf32>
    %29 = vector.shape_cast %28 : vector<8xf32> to vector<8x1xf32>
    %30 = vector.broadcast %29 : vector<8x1xf32> to vector<8x8xf32>
    %31 = arith.divf %27, %30 : vector<8x8xf32>
    %32 = vector.shape_cast %31 : vector<8x8xf32> to vector<8x8x1xf32>
    %33 = vector.broadcast %32 : vector<8x8x1xf32> to vector<8x8x32xf32>
    %34 = arith.mulf %33, %0 : vector<8x8x32xf32>
    %cst_15 = arith.constant dense<0.000000e+00> : vector<8x32xf32>
    %35 = vector.multi_reduction <add>, %34, %cst_15 [1] : vector<8x8x32xf32> to vector<8x32xf32>
    %c0_16 = arith.constant 0 : index
    %c0_17 = arith.constant 0 : index
    %36 = vector.load %arg5[%c0_16, %c0_17] : memref<32x16xf32, #tpu.memory_space<vmem>>, vector<32x16xf32>
    %cst_18 = arith.constant dense<0.000000e+00> : vector<8x16xf32>
    %37 = tpu.matmul %35, %36, %cst_18 {dimension_numbers = #tpu.dot_dimension_numbers<[1], [0], [0], [1], [0, 0, 1, 1], [], []>} : vector<8x32xf32>, vector<32x16xf32>, vector<8x16xf32> -> vector<8x16xf32>
    %c0_19 = arith.constant 0 : index
    %c0_20 = arith.constant 0 : index
    %38 = vector.load %arg6[%c0_19, %c0_20] : memref<1x16xf32, #tpu.memory_space<vmem>>, vector<1x16xf32>
    %39 = vector.broadcast %38 : vector<1x16xf32> to vector<8x16xf32>
    %40 = arith.addf %37, %39 : vector<8x16xf32>
    %cst_21 = arith.constant 0.000000e+00 : f32
    %41 = vector.broadcast %cst_21 : f32 to vector<8x16xf32>
    %42 = arith.maximumf %40, %41 : vector<8x16xf32>
    %c0_22 = arith.constant 0 : index
    %c0_23 = arith.constant 0 : index
    %43 = vector.load %arg7[%c0_22, %c0_23] : memref<16x1024xf32, #tpu.memory_space<vmem>>, vector<16x1024xf32>
    %cst_24 = arith.constant dense<0.000000e+00> : vector<8x1024xf32>
    %44 = tpu.matmul %42, %43, %cst_24 {dimension_numbers = #tpu.dot_dimension_numbers<[1], [0], [0], [1], [0, 0, 1, 1], [], []>} : vector<8x16xf32>, vector<16x1024xf32>, vector<8x1024xf32> -> vector<8x1024xf32>
    %c0_25 = arith.constant 0 : index
    %c0_26 = arith.constant 0 : index
    %45 = vector.load %arg8[%c0_25, %c0_26] : memref<1x1024xf32, #tpu.memory_space<vmem>>, vector<1x1024xf32>
    %46 = vector.broadcast %45 : vector<1x1024xf32> to vector<8x1024xf32>
    %47 = arith.addf %44, %46 : vector<8x1024xf32>
    %c0_27 = arith.constant 0 : index
    %c0_28 = arith.constant 0 : index
    %48 = vector.load %arg9[%c0_27, %c0_28] : memref<8x1024xf32, #tpu.memory_space<vmem>>, vector<8x1024xf32>
    tpu.vector_store %arg9[%c0_27, %c0_28], %47 {strides = array<i32>} : memref<8x1024xf32, #tpu.memory_space<vmem>>, vector<8x1024xf32>,
    return
  }
}

</mosaic_0001>

<bundles_post_ra>
// kernel: metanet_forward.1
= control target key start
LH: loop header
LB: loop body
LE: loop exit
PB: predicated region body
PF: predicated region fallthrough
CT: control target
= control target key end

     0   :  { %14 = vsyncpa [#allocation3], 0  ;;  %s1876_s0 = inlined_call_operand.vmem [shape: f32[8,8,32], index: 0, kind: input, shape index: {}]   ;;  %s1877_s1 = inlined_call_operand.vmem [shape: s32[8,8], index: 1, kind: input, shape index: {}]   ;;  %s1878_s2 = inlined_call_operand.hbm [shape: f32[32,32], index: 2, kind: input, shape index: {}]   ;;  %s1879_s3 = inlined_call_operand.vmem [shape: f32[1,32], index: 3, kind: input, shape index: {}]   ;;  %s1880_s4 = inlined_call_operand.vmem [shape: f32[1,32], index: 4, kind: input, shape index: {}]   ;;  %s1881_s5 = inlined_call_operand.vmem [shape: f32[32,16], index: 5, kind: input, shape index: {}]   ;;  %s1882_s6 = inlined_call_operand.hbm [shape: f32[1,16], index: 6, kind: input, shape index: {}]   ;;  %s1883_s7 = inlined_call_operand.hbm [shape: f32[16,1024], index: 7, kind: input, shape index: {}]   ;;  %s1884_s8 = inlined_call_operand.hbm [shape: f32[1,1024], index: 8, kind: input, shape index: {}]   ;;  %s1885_s9 = inlined_call_operand.hbm [shape: f32[8,1024], index: 9, kind: output, shape index: {}]  }
   0x1   :  { %15 = vsyncpa [#allocation6], 0 }
   0x2   :  { %16 = vsyncpa [#allocation9], 0 }
   0x3   :  { %17 = vsyncpa [#allocation4], 0  ;;  %s1474_s30 = smov [#allocation5]   ;;  %s1475_s11 = smov [#allocation2]  }
   0x4   :  { %s46_s10 = sshll.u32 %s1474_s30, 4  ;;  %s27_s12 = sshll.u32 %s1475_s11, 4  ;;  %s47_s10 = int_to_ptr.vmem [resolvable:$true] %s46_s10  ;;  %s1537_s12 = int_to_ptr.vmem [resolvable:$true] %s27_s12 }
   0x5   :  { %s1356_s15 = scalar_lea.hbm %s1882_s6, 16 }
   0x6   :  { %p1357_p0 = scmp.ne.s32.totalorder %s1882_s6, %s1356_s15  ;;  %p1360_p1 = scmp.lt.u32.totalorder %s1356_s15, %s1882_s6 }
   0x8   :  { %p1362_p2 = pnand %p1360_p1, %p1357_p0 }
   0xa   :  { %1365 = shalt.err (!%p1362_p2)
}
   0xb   :  { %s1366_s20 = scalar_lea.vmem %s47_s10, 16  ;;  %s1370_s21 = scalar_lea.vmem %s47_s10, 32 }
   0xc   :  { %p1367_p3 = scmp.ne.s32.totalorder %s47_s10, %s1366_s20  ;;  %p1371_p4 = scmp.lt.s32.totalorder %s47_s10, %s47_s10 }
   0xd   :  { %p1372_p5 = scmp.lt.s32.totalorder %s1370_s21, %s1366_s20 }
   0xf   :  { %p1373_p6 = por %p1372_p5, %p1371_p4 }
  0x11   :  { %p1374_p7 = pnand %p1373_p6, %p1367_p3 }
  0x13   :  { %1377 = shalt.err (!%p1374_p7)
}
  0x14   :  { %49 = dma.hbm_to_vmem [thread:$0]  %s1882_s6, 16, %s47_s10, [#allocation6]  }
  0x15   :  { %s1378_s26 = scalar_lea.hbm %s1878_s2, 512 }
  0x16   :  { %p1379_p8 = scmp.ne.s32.totalorder %s1878_s2, %s1378_s26  ;;  %p1382_p9 = scmp.lt.u32.totalorder %s1378_s26, %s1878_s2 }
  0x18   :  { %p1384_p10 = pnand %p1382_p9, %p1379_p8 }
  0x1a   :  { %1387 = shalt.err (!%p1384_p10)
}
  0x1b   :  { %s1388_s11 = scalar_lea.vmem %s1537_s12, 512  ;;  %p1393_p12 = scmp.lt.s32.totalorder %s1537_s12, %s1537_s12 }
  0x1c   :  { %p1389_p11 = scmp.ne.s32.totalorder %s1537_s12, %s1388_s11  ;;  %p1394_p13 = scmp.lt.s32.totalorder %s1388_s11, %s1388_s11 }
  0x1e   :  { %p1395_p0 = por %p1394_p13, %p1393_p12 }
  0x20   :  { %p1396_p1 = pnand %p1395_p0, %p1389_p11 }
  0x22   :  { %1399 = shalt.err (!%p1396_p1)
}
  0x23   :  { %s1476_s6 = smov 128   ;;  %s1477_s10 = smov 8  }
  0x24   :  { %33 = dma.hbm_to_vmem [thread:$0]  %s1878_s2, 512, %s1537_s12, [#allocation3], %s1476_s6, %s1476_s6, %s1477_s10  }
  0x25   :  { %s1478_s15 = smov [#allocation7]   ;;  %s1400_s19 = scalar_lea.hbm %s1883_s7, 2048 }
  0x26   :  { %s55_s16 = sshll.u32 %s1478_s15, 4  ;;  %p1401_p2 = scmp.ne.s32.totalorder %s1883_s7, %s1400_s19  ;;  %s56_s16 = int_to_ptr.vmem [resolvable:$true] %s55_s16 }
  0x27   :  { %p1404_p3 = scmp.lt.u32.totalorder %s1400_s19, %s1883_s7 }
  0x29   :  { %p1406_p4 = pnand %p1404_p3, %p1401_p2 }
  0x2b   :  { %1409 = shalt.err (!%p1406_p4)
}
  0x2c   :  { %s1410_s24 = scalar_lea.vmem %s56_s16, 2048  ;;  %p1415_p6 = scmp.lt.s32.totalorder %s56_s16, %s56_s16 }
  0x2d   :  { %p1411_p5 = scmp.ne.s32.totalorder %s56_s16, %s1410_s24  ;;  %p1416_p7 = scmp.lt.s32.totalorder %s1410_s24, %s1410_s24 }
  0x2f   :  { %p1417_p8 = por %p1416_p7, %p1415_p6 }
  0x31   :  { %p1418_p9 = pnand %p1417_p8, %p1411_p5 }
  0x33   :  { %1421 = shalt.err (!%p1418_p9)
}
  0x34   :  { %s1479_s2 = smov 1024   ;;  %s1480_s12 = smov 64  }
  0x35   :  { %61 = dma.hbm_to_vmem [thread:$0]  %s1883_s7, 2048, %s56_s16, [#allocation6], %s1479_s2, %s1479_s2, %s1480_s12  }
  0x36   :  { %s1481_s27 = smov [#allocation8]   ;;  %s1422_s11 = scalar_lea.hbm %s1884_s8, 128 }
  0x37   :  { %s68_s28 = sshll.u32 %s1481_s27, 4  ;;  %p1423_p10 = scmp.ne.s32.totalorder %s1884_s8, %s1422_s11  ;;  %s69_s28 = int_to_ptr.vmem [resolvable:$true] %s68_s28 }
  0x38   :  { %p1426_p11 = scmp.lt.u32.totalorder %s1422_s11, %s1884_s8 }
  0x3a   :  { %p1428_p12 = pnand %p1426_p11, %p1423_p10 }
  0x3c   :  { %1431 = shalt.err (!%p1428_p12)
}
  0x3d   :  { %s1432_s15 = scalar_lea.vmem %s69_s28, 128  ;;  %p1437_p0 = scmp.lt.s32.totalorder %s69_s28, %s69_s28 }
  0x3e   :  { %p1433_p13 = scmp.ne.s32.totalorder %s69_s28, %s1432_s15  ;;  %p1438_p1 = scmp.lt.s32.totalorder %s1432_s15, %s1432_s15 }
  0x40   :  { %p1439_p2 = por %p1438_p1, %p1437_p0 }
  0x42   :  { %p1440_p3 = pnand %p1439_p2, %p1433_p13 }
  0x44   :  { %1443 = shalt.err (!%p1440_p3)
}
  0x45   :  { %71 = dma.hbm_to_vmem [thread:$0]  %s1884_s8, 128, %s69_s28, [#allocation9]  }
  0x46   :  { %1466 = dma.done.wait [#allocation3], 512  }
  0x47   :  { %1467 = vsyncadd [#allocation3], 4294966784 }
  0x48   :  { %1468 = dma.done.wait [#allocation6], 2064  }
  0x49   :  { %1469 = vsyncadd [#allocation6], 4294965232 }
  0x4a   :  { %1470 = dma.done.wait [#allocation9], 128  }
  0x4b   :  { %1471 = vsyncadd [#allocation9], 4294967168  ;;  %v286_v0 = vlaneseq  ;;  %vm103_vm0 = vcmask 261120   ;;  %v92_v1 = vld [vmem:[#allocation2] sm:$0xff]  ;;  %v93_v2 = vld [vmem:[#allocation2 + $0x8] sm:$0xff]  ;;  %v1482_v12 = vmov 0.0  }
  0x4c   :  { %v94_v3 = vld [vmem:[#allocation2 + $0x10] sm:$0xff]  ;;  %v1279_v4 = vpack.c.bf16 %v93_v2, %v92_v1  ;;  %v95_v5 = vld [vmem:[#allocation2 + $0x18] sm:$0xff]  ;;  %v1595_v6 = vld [vmem:[%s1876_s0] sm:$0xff]  ;;  %vm424_vm2 = vcmask 1041409   ;;  %vm426_vm3 = vcmask 1042434   ;;  %vm428_vm4 = vcmask 1043459  }
  0x4d   :  { %v1598_v7 = vshrl.u32 %v286_v0, 7  ;;  %v1283_v8 = vpack.c.bf16 %v95_v5, %v94_v3  ;;  %1256 = vmatprep.mubr.msk.f32.mxu0 %vm103_vm0, %v1595_v6  ;;  %v280_v9 = vld [vmem:[%s1877_s1] sm:$0xff]  ;;  %v1620_v16 = vld [vmem:[%s1876_s0 + $0x8] sm:$0xff]  ;;  %v1628_v18 = vld [vmem:[%s1876_s0 + $0x10] sm:$0xff]  ;;  %vm430_vm5 = vcmask 1044484   ;;  %vm432_vm6 = vcmask 1045509  }
  0x4e   :  { %1280 = vmatprep.subr.bf16.mxu0 %v1279_v4  ;;  %vm281_vm1 = vcmp.eq.s32.totalorder %v280_v9, 0  ;;  %v1646_v23 = vld [vmem:[%s1876_s0 + $0x18] sm:$0xff]  ;;  %v1653_v25 = vld [vmem:[%s1876_s0 + $0x20] sm:$0xff]  ;;  %v1667_v28 = vld [vmem:[%s1876_s0 + $0x28] sm:$0xff]  ;;  %vm434_vm7 = vcmask 1046534   ;;  %vm436_vm8 = vcmask 1047559  }
  0x4f   :  { %1282 = vmatpush3.bf16.msra.mxu0 %v1279_v4  ;;  %v1606_v10 = vsub.s32 1, %v1598_v7  ;;  %v1609_v11 = vsub.s32 0, %v1598_v7  ;;  %v1224_v13 = vsel %vm281_vm1, 1.0, %v1482_v12  ;;  %v1615_v15 = vsub.s32 2, %v1598_v7  ;;  %v1672_v29 = vld [vmem:[%s1876_s0 + $0x30] sm:$0xff]  ;;  %v1683_v31 = vld [vmem:[%s1876_s0 + $0x38] sm:$0xff] }
  0x50   :  { %1284 = vmatprep.subr.bf16.mxu0 %v1283_v8  ;;  %v1612_v14 = vmul.f32 1e+08, %v1224_v13  ;;  %v1623_v17 = vsub.s32 4, %v1598_v7  ;;  %v1639_v22 = vsub.s32 3, %v1598_v7  ;;  %v1660_v27 = vsub.s32 5, %v1598_v7 }
  0x51   :  { %v1214_v32 = vld [vmem:[%s1879_s3] ss:$0 sm:$0xff]  ;;  %vm439_vm9 = vcmask 64512   ;;  %vm1485_vm10 = vmmov 0   ;;  %vm901_vm11 = vcmask 130048  }
  0x52   :  { %v296_v19 = vrot.slane %v1612_v14, %v1606_v10  ;;  %v289_v20 = vrot.slane %v1612_v14, %v1609_v11  ;;  %v303_v21 = vrot.slane %v1612_v14, %v1615_v15  ;;  %v317_v24 = vrot.slane %v1612_v14, %v1623_v17  ;;  %v1223_v37 = vld [vmem:[%s1880_s4] ss:$0 sm:$0xff]  ;;  %1276 = vmatprep.mubr.msk.f32.mxu1 %vm1485_vm10, %v1482_v12 }
  0x53   :  { %1286 = vmatpush3.bf16.msra.mxu0 %v1283_v8  ;;  %v310_v26 = vrot.slane %v1612_v14, %v1639_v22  ;;  %v324_v30 = vrot.slane %v1612_v14, %v1660_v27 }
  0x54   :  { %298 = vbcast.lane.b32.xlu1 %v296_v19, 256  ;;  %291 = vbcast.lane.b32.xlu0 %v289_v20, 256 }
  0x56   :  { %1257 = vmatmul.mubr.msk.f32.vlgmr.msra.gmra.mrb[0].mxu0 %vm103_vm0, %v1620_v16 }
  0x57   :  { %1259 = vmatprep.mubr.msk.f32.mxu0 %vm103_vm0, %v1628_v18 }
  0x58   :  { %305 = vbcast.lane.b32.xlu1 %v303_v21, 256  ;;  %319 = vbcast.lane.b32.xlu0 %v317_v24, 256  ;;  %v1483_v21 = vmov 0   ;;  %v1703_v24 = vsub.s32 7, %v1598_v7 }
  0x59   :  { %1322 = vset.pattern.permute.xlu1 %v1483_v21  ;;  %1323 = vset.pattern.permute.xlu0 %v1483_v21 }
  0x5a   :  { %1260 = vmatmul.mubr.msk.f32.gmra.mrb[2].mxu0 %vm103_vm0, %v1646_v23 }
  0x5b   :  { %1262 = vmatprep.mubr.msk.f32.mxu0 %vm103_vm0, %v1653_v25 }
  0x5c   :  { %312 = vbcast.lane.b32.xlu1 %v310_v26, 256  ;;  %v1706_v26 = vsub.s32 6, %v1598_v7 }
  0x5e   :  { %1263 = vmatmul.mubr.msk.f32.gmra.mrb[4].mxu0 %vm103_vm0, %v1667_v28 }
  0x5f   :  { %1265 = vmatprep.mubr.msk.f32.mxu0 %vm103_vm0, %v1672_v29 }
  0x60   :  { %326 = vbcast.lane.b32.xlu1 %v324_v30, 256  ;;  %v338_v30 = vrot.slane %v1612_v14, %v1703_v24 }
  0x62   :  { %1266 = vmatmul.mubr.msk.f32.gmra.mrb[6].mxu0 %vm103_vm0, %v1683_v31 }
  0x63   :  { %1182 = vmatprep.mubr.f32.mxu0 %v1482_v12 }
 0x129   :  { %v1258_v33 = vpop.f32.mrb[0].mxu0 }
 0x12a   :  { %v200_v34 = vadd.f32 %v1258_v33, %v1214_v32  ;;  %v194_v35 = vpop.f32.mrb[1].mxu0  ;;  %v299_v33 = vpop.permute.xlu1 %298 }
 0x12b   :  { %v195_v36 = vadd.f32 %v1214_v32, %v194_v35  ;;  %v292_v35 = vpop.permute.xlu0 %291 }
 0x12c   :  { %v234_v38 = vmax.f32 %v200_v34, 0.0 }
 0x12d   :  { %v233_v39 = vmax.f32 %v195_v36, 0.0  ;;  %v1261_v40 = vpop.f32.mrb[2].mxu0 }
 0x12e   :  { %v210_v41 = vadd.f32 %v1261_v40, %v1214_v32  ;;  %v204_v42 = vpop.f32.mrb[3].mxu0  ;;  %v249_v43 = vmul.f32 %v1223_v37, %v234_v38  ;;  %v306_v34 = vpop.permute.xlu1 %305 }
 0x12f   :  { %v205_v44 = vadd.f32 %v1214_v32, %v204_v42  ;;  %v248_v47 = vmul.f32 %v1223_v37, %v233_v39 }
 0x130   :  { %v236_v45 = vmax.f32 %v210_v41, 0.0  ;;  %v259_v46 = vsel %vm103_vm0, %v249_v43, 0.0 }
 0x131   :  { %v235_v48 = vmax.f32 %v205_v44, 0.0  ;;  %260 = vadd.xlane.f32.xlu0 %v259_v46  ;;  %v1264_v49 = vpop.f32.mrb[4].mxu0  ;;  %v256_v56 = vsel %vm103_vm0, %v248_v47, 0.0 }
 0x132   :  { %v220_v50 = vadd.f32 %v1264_v49, %v1214_v32  ;;  %v214_v51 = vpop.f32.mrb[5].mxu0  ;;  %v251_v52 = vmul.f32 %v1223_v37, %v236_v45  ;;  %v313_v36 = vpop.permute.xlu1 %312 }
 0x133   :  { %v215_v53 = vadd.f32 %v1214_v32, %v214_v51  ;;  %v250_v57 = vmul.f32 %v1223_v37, %v235_v48 }
 0x134   :  { %v238_v54 = vmax.f32 %v220_v50, 0.0  ;;  %v265_v55 = vsel %vm103_vm0, %v251_v52, 0.0 }
 0x135   :  { %v237_v58 = vmax.f32 %v215_v53, 0.0  ;;  %266 = vadd.xlane.f32.xlu1 %v265_v55  ;;  %v1267_v59 = vpop.f32.mrb[6].mxu0  ;;  %257 = vadd.xlane.f32.xlu0 %v256_v56  ;;  %v262_v2 = vsel %vm103_vm0, %v250_v57, 0.0  ;;  %v391_v56 = vand.u32 127, %v286_v0 }
 0x136   :  { %v230_v60 = vadd.f32 %v1267_v59, %v1214_v32  ;;  %v224_v61 = vpop.f32.mrb[7].mxu0  ;;  %v253_v3 = vmul.f32 %v1223_v37, %v238_v54  ;;  %v327_v38 = vpop.permute.xlu1 %326 }
 0x137   :  { %v225_v62 = vadd.f32 %v1214_v32, %v224_v61  ;;  %v252_v63 = vmul.f32 %v1223_v37, %v237_v58  ;;  %v331_v32 = vrot.slane %v1612_v14, %v1706_v26  ;;  %v1732_v59 = vsub.s32 %v391_v56, %v1598_v7 }
 0x138   :  { %v240_v1 = vmax.f32 %v230_v60, 0.0  ;;  %v271_v9 = vsel %vm103_vm0, %v253_v3, 0.0 }
 0x139   :  { %v239_v4 = vmax.f32 %v225_v62, 0.0  ;;  %263 = vadd.xlane.f32.xlu1 %v262_v2  ;;  %v268_v5 = vsel %vm103_vm0, %v252_v63, 0.0 }
 0x13a   :  { %269 = vadd.xlane.f32.xlu0 %v268_v5  ;;  %v255_v13 = vmul.f32 %v1223_v37, %v240_v1 }
 0x13b   :  { %v254_v8 = vmul.f32 %v1223_v37, %v239_v4  ;;  %v320_v37 = vpop.permute.xlu0 %319 }
 0x13c   :  { %v277_v20 = vsel %vm103_vm0, %v255_v13, 0.0 }
 0x13d   :  { %272 = vadd.xlane.f32.xlu1 %v271_v9  ;;  %v274_v19 = vsel %vm103_vm0, %v254_v8, 0.0 }
 0x13e   :  { %275 = vadd.xlane.f32.xlu0 %v274_v19 }
 0x141   :  { %278 = vadd.xlane.f32.xlu1 %v277_v20 }
 0x152   :  { %340 = vbcast.lane.b32.xlu1 %v338_v30, 256 }
 0x154   :  { %333 = vbcast.lane.b32.xlu0 %v331_v32, 256 }
 0x1be   :  { %v261_v39 = vpop.xlane.xlu0 %260 }
 0x1bf   :  { %v1712_v40 = vsub.f32 %v261_v39, %v299_v33 }
 0x1c1   :  { %370 = vperm.xlu1 %1322, %v1712_v40  }
 0x1c2   :  { %v267_v41 = vpop.xlane.xlu1 %266  ;;  %v258_v42 = vpop.xlane.xlu0 %257 }
 0x1c3   :  { %v350_v43 = vsub.f32 %v258_v42, %v292_v35  ;;  %v1715_v45 = vsub.f32 %v267_v41, %v313_v36 }
 0x1c5   :  { %367 = vperm.xlu0 %1323, %v350_v43  }
 0x1c6   :  { %v264_v44 = vpop.xlane.xlu1 %263 }
 0x1c7   :  { %v352_v14 = vsub.f32 %v264_v44, %v306_v34  ;;  %v270_v46 = vpop.xlane.xlu0 %269 }
 0x1c8   :  { %v1718_v48 = vsub.f32 %v270_v46, %v320_v37 }
 0x1c9   :  { %373 = vperm.xlu1 %1322, %v352_v14   ;;  %376 = vperm.xlu0 %1323, %v1715_v45  }
 0x1ca   :  { %v273_v47 = vpop.xlane.xlu1 %272 }
 0x1cb   :  { %v1720_v49 = vsub.f32 %v273_v47, %v327_v38  ;;  %v276_v50 = vpop.xlane.xlu0 %275 }
 0x1cd   :  { %382 = vperm.xlu0 %1323, %v1720_v49   ;;  %379 = vperm.xlu1 %1322, %v1718_v48  }
 0x1ce   :  { %v279_v51 = vpop.xlane.xlu1 %278 }
 0x1cf   :  { %v334_v52 = vpop.permute.xlu0 %333 }
 0x1d0   :  { %v1724_v53 = vsub.f32 %v276_v50, %v334_v52 }
 0x1d2   :  { %v341_v54 = vpop.permute.xlu1 %340  ;;  %385 = vperm.xlu1 %1322, %v1724_v53  }
 0x1d3   :  { %v1727_v55 = vsub.f32 %v279_v51, %v341_v54 }
 0x1d5   :  { %388 = vperm.xlu0 %1323, %v1727_v55  }
 0x240   :  { %v371_v57 = vpop.permute.xlu1 %370 }
 0x241   :  { %v399_v1 = vrot.slane %v371_v57, %v1732_v59 }
 0x244   :  { %v368_v58 = vpop.permute.xlu0 %367 }
 0x245   :  { %v395_v62 = vrot.slane %v368_v58, %v1732_v59 }
 0x247   :  { %v425_v3 = vsel %vm424_vm2, %v399_v1, %v395_v62 }
 0x248   :  { %v374_v60 = vpop.permute.xlu1 %373  ;;  %v377_v61 = vpop.permute.xlu0 %376 }
 0x249   :  { %v403_v63 = vrot.slane %v374_v60, %v1732_v59  ;;  %v407_v0 = vrot.slane %v377_v61, %v1732_v59 }
 0x24b   :  { %v427_v4 = vsel %vm426_vm3, %v403_v63, %v425_v3 }
 0x24c   :  { %v380_v2 = vpop.permute.xlu1 %379  ;;  %v383_v5 = vpop.permute.xlu0 %382  ;;  %v429_v8 = vsel %vm428_vm4, %v407_v0, %v427_v4 }
 0x24d   :  { %v411_v7 = vrot.slane %v380_v2, %v1732_v59  ;;  %v415_v9 = vrot.slane %v383_v5, %v1732_v59 }
 0x24f   :  { %v431_v19 = vsel %vm430_vm5, %v411_v7, %v429_v8 }
 0x250   :  { %v433_v30 = vsel %vm432_vm6, %v415_v9, %v431_v19 }
 0x251   :  { %v386_v13 = vpop.permute.xlu1 %385 }
 0x252   :  { %v419_v20 = vrot.slane %v386_v13, %v1732_v59 }
 0x254   :  { %v389_v21 = vpop.permute.xlu0 %388  ;;  %v435_v33 = vsel %vm434_vm7, %v419_v20, %v433_v30 }
 0x255   :  { %v423_v32 = vrot.slane %v389_v21, %v1732_v59 }
 0x257   :  { %v437_v34 = vsel %vm436_vm8, %v423_v32, %v435_v33 }
 0x258   :  { %v440_v35 = vsel %vm439_vm9, %v437_v34, -inf }
 0x259   :  { %441 = vmax.xlane.f32.xlu1 %v440_v35 }
 0x2e6   :  { %v442_v36 = vpop.xlane.xlu1 %441 }
 0x2e7   :  { %v447_v37 = vrot.slane %v442_v36, %v1609_v11  ;;  %v451_v38 = vrot.slane %v442_v36, %v1606_v10  ;;  %v455_v39 = vrot.slane %v442_v36, %v1615_v15  ;;  %v459_v46 = vrot.slane %v442_v36, %v1639_v22 }
 0x2e8   :  { %v463_v51 = vrot.slane %v442_v36, %v1623_v17  ;;  %v467_v56 = vrot.slane %v442_v36, %v1660_v27 }
 0x2e9   :  { %v484_v41 = vsub.f32 %v350_v43, %v447_v37  ;;  %v485_v42 = vsub.f32 %v1712_v40, %v451_v38  ;;  %v486_v47 = vsub.f32 %v352_v14, %v455_v39  ;;  %v487_v52 = vsub.f32 %v1715_v45, %v459_v46 }
 0x2ea   :  { %v488_v57 = vsub.f32 %v1718_v48, %v463_v51  ;;  %v471_v40 = vrot.slane %v442_v36, %v1706_v26  ;;  %v489_v14 = vsub.f32 %v1720_v49, %v467_v56  ;;  %v475_v45 = vrot.slane %v442_v36, %v1703_v24 }
 0x2eb   :  { %v492_v44 = vmul.f32 1.442695, %v484_v41  ;;  %v494_v50 = vmul.f32 1.442695, %v485_v42  ;;  %v496_v54 = vmul.f32 1.442695, %v486_v47 }
 0x2ec   :  { %v498_v43 = vmul.f32 1.442695, %v487_v52  ;;  %v500_v60 = vmul.f32 1.442695, %v488_v57  ;;  %v490_v48 = vsub.f32 %v1724_v53, %v471_v40  ;;  %v502_v62 = vmul.f32 1.442695, %v489_v14 }
 0x2ed   :  { %1324 = vpow2.f32 %v492_v44  ;;  %v491_v1 = vsub.f32 %v1727_v55, %v475_v45 }
 0x2ee   :  { %1326 = vpow2.f32 %v494_v50  ;;  %v504_v49 = vmul.f32 1.442695, %v490_v48 }
 0x2ef   :  { %1328 = vpow2.f32 %v496_v54  ;;  %v506_v3 = vmul.f32 1.442695, %v491_v1 }
 0x2f0   :  { %1330 = vpow2.f32 %v498_v43 }
 0x2f1   :  { %1332 = vpow2.f32 %v500_v60 }
 0x2f2   :  { %1334 = vpow2.f32 %v502_v62 }
 0x2f3   :  { %1336 = vpow2.f32 %v504_v49 }
 0x2f4   :  { %1338 = vpow2.f32 %v506_v3 }
 0x2f7   :  { %v1759_v58 = vpop.eup %1324 }
 0x2f8   :  { %517 = vperm.xlu0 %1323, %v1759_v58   ;;  %v1764_v61 = vpop.eup %1326 }
 0x2f9   :  { %v1769_v63 = vpop.eup %1328 }
 0x2fa   :  { %v1773_v2 = vpop.eup %1330 }
 0x2fb   :  { %v1333_v0 = vpop.eup %1332 }
 0x2fc   :  { %520 = vperm.xlu0 %1323, %v1764_v61   ;;  %v1776_v53 = vpop.eup %1334 }
 0x2fd   :  { %v1779_v4 = vpop.eup %1336 }
 0x2fe   :  { %v1782_v55 = vpop.eup %1338 }
 0x300   :  { %523 = vperm.xlu0 %1323, %v1769_v63  }
 0x304   :  { %526 = vperm.xlu0 %1323, %v1773_v2  }
 0x308   :  { %529 = vperm.xlu0 %1323, %v1333_v0  }
 0x30c   :  { %532 = vperm.xlu0 %1323, %v1776_v53  }
 0x310   :  { %535 = vperm.xlu0 %1323, %v1779_v4  }
 0x314   :  { %538 = vperm.xlu0 %1323, %v1782_v55  }
 0x377   :  { %v518_v7 = vpop.permute.xlu0 %517 }
 0x378   :  { %v543_v30 = vrot.slane %v518_v7, %v1732_v59 }
 0x37b   :  { %v521_v5 = vpop.permute.xlu0 %520 }
 0x37c   :  { %v547_v20 = vrot.slane %v521_v5, %v1732_v59 }
 0x37e   :  { %v572_v35 = vsel %vm424_vm2, %v547_v20, %v543_v30  ;;  %v1484_v30 = vmov 0.0|0.0  }
 0x37f   :  { %v524_v8 = vpop.permute.xlu0 %523  ;;  %1287 = vmatprep.subr.bf16.mxu1 %v1484_v30 }
 0x380   :  { %v551_v21 = vrot.slane %v524_v8, %v1732_v59 }
 0x382   :  { %v573_v37 = vsel %vm426_vm3, %v551_v21, %v572_v35 }
 0x383   :  { %v527_v9 = vpop.permute.xlu0 %526 }
 0x384   :  { %v555_v32 = vrot.slane %v527_v9, %v1732_v59 }
 0x386   :  { %v574_v39 = vsel %vm428_vm4, %v555_v32, %v573_v37  ;;  %v850_v32 = vld [vmem:[#allocation7 + $0x38] sm:$0xff] }
 0x387   :  { %v530_v13 = vpop.permute.xlu0 %529 }
 0x388   :  { %v559_v33 = vrot.slane %v530_v13, %v1732_v59 }
 0x38a   :  { %v575_v41 = vsel %vm430_vm5, %v559_v33, %v574_v39  ;;  %v858_v33 = vld [vmem:[#allocation7 + $0x78] sm:$0xff] }
 0x38b   :  { %v533_v19 = vpop.permute.xlu0 %532  ;;  %v1305_v35 = vpack.c.bf16 %v858_v33, %v850_v32 }
 0x38c   :  { %v563_v36 = vrot.slane %v533_v19, %v1732_v59 }
 0x38d   :  { %1306 = vmatprep.subr.bf16.mxu0 %v1305_v35 }
 0x38e   :  { %v576_v44 = vsel %vm432_vm6, %v563_v36, %v575_v41  ;;  %v857_v36 = vld [vmem:[#allocation7 + $0x70] sm:$0xff] }
 0x38f   :  { %v536_v34 = vpop.permute.xlu0 %535 }
 0x390   :  { %v567_v38 = vrot.slane %v536_v34, %v1732_v59  ;;  %v849_v34 = vld [vmem:[#allocation7 + $0x30] sm:$0xff] }
 0x391   :  { %v1307_v37 = vpack.c.bf16 %v857_v36, %v849_v34 }
 0x392   :  { %v577_v47 = vsel %vm434_vm7, %v567_v38, %v576_v44 }
 0x393   :  { %v539_v42 = vpop.permute.xlu0 %538  ;;  %1308 = vmatpush1.bf16.msra.mxu0 %v1307_v37 }
 0x394   :  { %v571_v46 = vrot.slane %v539_v42, %v1732_v59 }
 0x396   :  { %v578_v50 = vsel %vm436_vm8, %v571_v46, %v577_v47 }
 0x397   :  { %v580_v51 = vsel %vm439_vm9, %v578_v50, 0.0 }
 0x398   :  { %581 = vadd.xlane.f32.xlu0 %v580_v51 }
 0x425   :  { %v582_v52 = vpop.xlane.xlu0 %581 }
 0x426   :  { %v603_v54 = vrot.slane %v582_v52, %v1623_v17  ;;  %v587_v56 = vrot.slane %v582_v52, %v1609_v11  ;;  %v591_v57 = vrot.slane %v582_v52, %v1606_v10  ;;  %v595_v43 = vrot.slane %v582_v52, %v1615_v15 }
 0x427   :  { %v599_v59 = vrot.slane %v582_v52, %v1639_v22  ;;  %v607_v45 = vrot.slane %v582_v52, %v1660_v27  ;;  %v611_v1 = vrot.slane %v582_v52, %v1706_v26  ;;  %v615_v7 = vrot.slane %v582_v52, %v1703_v24 }
 0x428   :  { %1340 = vrcp.f32 %v603_v54 }
 0x429   :  { %1342 = vrcp.f32 %v587_v56 }
 0x42a   :  { %1344 = vrcp.f32 %v591_v57 }
 0x42b   :  { %1346 = vrcp.f32 %v595_v43 }
 0x42c   :  { %1348 = vrcp.f32 %v599_v59 }
 0x42d   :  { %1350 = vrcp.f32 %v607_v45 }
 0x42e   :  { %1352 = vrcp.f32 %v611_v1 }
 0x42f   :  { %1354 = vrcp.f32 %v615_v7 }
 0x432   :  { %v1341_v40 = vpop.eup %1340 }
 0x433   :  { %v1343_v14 = vpop.eup %1342  ;;  %v633_v60 = vmul.f32 %v1341_v40, %v1333_v0 }
 0x434   :  { %v625_v48 = vmul.f32 %v1343_v14, %v1759_v58  ;;  %v1345_v62 = vpop.eup %1344 }
 0x435   :  { %662 = vperm.xlu0 %1323, %v633_v60   ;;  %v627_v49 = vmul.f32 %v1345_v62, %v1764_v61  ;;  %v1347_v3 = vpop.eup %1346 }
 0x436   :  { %642 = vperm.xlu1 %1322, %v625_v48   ;;  %v629_v0 = vmul.f32 %v1347_v3, %v1769_v63  ;;  %v1349_v5 = vpop.eup %1348  ;;  %v744_v63 = vld [vmem:[%s1881_s5] sm:$0xff] }
 0x437   :  { %v631_v58 = vmul.f32 %v1349_v5, %v1773_v2  ;;  %v1351_v8 = vpop.eup %1350  ;;  %v745_v2 = vld [vmem:[%s1881_s5 + $0x8] sm:$0xff] }
 0x438   :  { %v635_v9 = vmul.f32 %v1351_v8, %v1776_v53  ;;  %v1353_v13 = vpop.eup %1352  ;;  %v1288_v21 = vpack.c.bf16 %v745_v2, %v744_v63  ;;  %v746_v53 = vld [vmem:[%s1881_s5 + $0x10] sm:$0xff] }
 0x439   :  { %v637_v61 = vmul.f32 %v1353_v13, %v1779_v4  ;;  %v1355_v19 = vpop.eup %1354  ;;  %v747_v4 = vld [vmem:[%s1881_s5 + $0x18] sm:$0xff]  ;;  %s1486_s5 = smov [#allocation10]  }
 0x43a   :  { %647 = vperm.xlu1 %1322, %v627_v49   ;;  %v639_v20 = vmul.f32 %v1355_v19, %v1782_v55  ;;  %1289 = vmatpush3.bf16.msra.mxu1 %v1288_v21  ;;  %v1291_v55 = vpack.c.bf16 %v747_v4, %v746_v53  ;;  %s1203_s18 = sshll.u32 %s1486_s5, 4  ;;  %s1204_s18 = int_to_ptr.vmem [resolvable:$true] %s1203_s18 }
 0x43b   :  { %1290 = vmatprep.subr.bf16.mxu1 %v1484_v30  ;;  %s1444_s8 = scalar_lea.vmem %s1204_s18, 1024  ;;  %p1449_p5 = scmp.lt.s32.totalorder %s1204_s18, %s1204_s18 }
 0x43c   :  { %p1445_p4 = scmp.ne.s32.totalorder %s1204_s18, %s1444_s8  ;;  %p1450_p6 = scmp.lt.s32.totalorder %s1444_s8, %s1444_s8 }
 0x43e   :  { %652 = vperm.xlu1 %1322, %v629_v0   ;;  %1292 = vmatpush3.bf16.msra.mxu1 %v1291_v55  ;;  %p1451_p7 = por %p1450_p6, %p1449_p5 }
 0x440   :  { %p1452_p8 = pnand %p1451_p7, %p1445_p4 }
 0x442   :  { %657 = vperm.xlu1 %1322, %v631_v58  }
 0x446   :  { %667 = vperm.xlu1 %1322, %v635_v9  }
 0x44a   :  { %672 = vperm.xlu1 %1322, %v637_v61  }
 0x44e   :  { %677 = vperm.xlu1 %1322, %v639_v20  }
 0x4b4   :  { %v663_v42 = vpop.permute.xlu0 %662 }
 0x4b5   :  { %v643_v38 = vpop.permute.xlu1 %642  ;;  %v684_v50 = vmul.f32 %v663_v42, %v1653_v25 }
 0x4b6   :  { %v680_v39 = vmul.f32 %v643_v38, %v1595_v6 }
 0x4b7   :  { %v716_v43 = vsel %vm103_vm0, %v684_v50, 0.0 }
 0x4b8   :  { %v688_v46 = vsel %vm103_vm0, %v680_v39, 0.0  ;;  %v717_v45 = vrot.slane %v716_v43, 4 }
 0x4b9   :  { %v648_v41 = vpop.permute.xlu1 %647  ;;  %v689_v54 = vrot.slane %v688_v46, 4 }
 0x4ba   :  { %v681_v44 = vmul.f32 %v648_v41, %v1620_v16  ;;  %v718_v0 = vadd.f32 %v717_v45, %v716_v43 }
 0x4bb   :  { %v690_v14 = vadd.f32 %v689_v54, %v688_v46 }
 0x4bc   :  { %v695_v47 = vsel %vm103_vm0, %v681_v44, 0.0  ;;  %v719_v2 = vrot.slane %v718_v0, 2 }
 0x4bd   :  { %v696_v51 = vrot.slane %v695_v47, 4  ;;  %v653_v52 = vpop.permute.xlu1 %652  ;;  %v691_v49 = vrot.slane %v690_v14, 2 }
 0x4be   :  { %v682_v56 = vmul.f32 %v653_v52, %v1628_v18  ;;  %v720_v37 = vadd.f32 %v719_v2, %v718_v0  ;;  %v846_v0 = vld [vmem:[#allocation7 + $0x18] sm:$0xff] }
 0x4bf   :  { %v697_v6 = vadd.f32 %v696_v51, %v695_v47 }
 0x4c0   :  { %v702_v57 = vsel %vm103_vm0, %v682_v56, 0.0  ;;  %v721_v52 = vrot.slane %v720_v37, 1 }
 0x4c1   :  { %v703_v59 = vrot.slane %v702_v57, 4  ;;  %v658_v40 = vpop.permute.xlu1 %657  ;;  %v698_v25 = vrot.slane %v697_v6, 2 }
 0x4c2   :  { %v683_v16 = vmul.f32 %v658_v40, %v1646_v23  ;;  %v692_v23 = vadd.f32 %v691_v49, %v690_v14  ;;  %v722_v40 = vadd.f32 %v721_v52, %v720_v37  ;;  %v852_v49 = vld [vmem:[#allocation7 + $0x48] sm:$0xff] }
 0x4c3   :  { %v704_v60 = vadd.f32 %v703_v59, %v702_v57  ;;  %v699_v58 = vadd.f32 %v698_v25, %v697_v6 }
 0x4c4   :  { %v709_v48 = vsel %vm103_vm0, %v683_v16, 0.0  ;;  %v693_v55 = vrot.slane %v692_v23, 1 }
 0x4c5   :  { %v710_v62 = vrot.slane %v709_v48, 4  ;;  %v668_v1 = vpop.permute.xlu1 %667  ;;  %v705_v3 = vrot.slane %v704_v60, 2  ;;  %v700_v53 = vrot.slane %v699_v58, 1 }
 0x4c6   :  { %v685_v18 = vmul.f32 %v668_v1, %v1667_v28  ;;  %v694_v42 = vadd.f32 %v693_v55, %v692_v23  ;;  %v844_v1 = vld [vmem:[#allocation7 + $0x8] sm:$0xff]  ;;  %v853_v23 = vld [vmem:[#allocation7 + $0x50] sm:$0xff] }
 0x4c7   :  { %v711_v7 = vadd.f32 %v710_v62, %v709_v48  ;;  %v706_v61 = vadd.f32 %v705_v3, %v704_v60  ;;  %v843_v3 = vld [vmem:[#allocation7] sm:$0xff] }
 0x4c8   :  { %v723_v5 = vsel %vm103_vm0, %v685_v18, 0.0  ;;  %v1293_v18 = vpack.c.bf16 %v852_v49, %v844_v1 }
 0x4c9   :  { %v712_v8 = vrot.slane %v711_v7, 2  ;;  %v724_v9 = vrot.slane %v723_v5, 4  ;;  %v673_v13 = vpop.permute.xlu1 %672  ;;  %v707_v32 = vrot.slane %v706_v61, 1 }
 0x4ca   :  { %v686_v19 = vmul.f32 %v673_v13, %v1672_v29  ;;  %v701_v29 = vadd.f32 %v700_v53, %v699_v58  ;;  %1294 = vmatprep.subr.bf16.mxu1 %v1293_v18  ;;  %v845_v13 = vld [vmem:[#allocation7 + $0x10] sm:$0xff] }
 0x4cb   :  { %v713_v20 = vadd.f32 %v712_v8, %v711_v7  ;;  %v725_v63 = vadd.f32 %v724_v9, %v723_v5  ;;  %v708_v44 = vadd.f32 %v707_v32, %v706_v61  ;;  %v851_v7 = vld [vmem:[#allocation7 + $0x40] sm:$0xff]  ;;  %v854_v5 = vld [vmem:[#allocation7 + $0x58] sm:$0xff] }
 0x4cc   :  { %v730_v21 = vsel %vm103_vm0, %v686_v19, 0.0  ;;  %v763_v54 = vsel %vm424_vm2, %v701_v29, %v694_v42  ;;  %v1295_v58 = vpack.c.bf16 %v851_v7, %v843_v3  ;;  %v1297_v8 = vpack.c.bf16 %v854_v5, %v846_v0  ;;  %v1225_v9 = vld [vmem:[#allocation5] ss:$0 sm:$0xff]  ;;  %v848_v19 = vld [vmem:[#allocation7 + $0x28] sm:$0xff]  ;;  %v859_v32 = vld [vmem:[#allocation8] sm:$0xff] }
 0x4cd   :  { %v726_v4 = vrot.slane %v725_v63, 2  ;;  %v731_v28 = vrot.slane %v730_v21, 4  ;;  %v678_v30 = vpop.permute.xlu1 %677  ;;  %v714_v34 = vrot.slane %v713_v20, 1  ;;  %v764_v57 = vsel %vm426_vm3, %v708_v44, %v763_v54 }
 0x4ce   :  { %v687_v33 = vmul.f32 %v678_v30, %v1683_v31  ;;  %v855_v30 = vld [vmem:[#allocation7 + $0x60] sm:$0xff]  ;;  %v872_v44 = vrot.slane %v859_v32, %v1615_v15 }
 0x4cf   :  { %v727_v35 = vadd.f32 %v726_v4, %v725_v63  ;;  %v732_v36 = vadd.f32 %v731_v28, %v730_v21  ;;  %v715_v46 = vadd.f32 %v714_v34, %v713_v20  ;;  %v856_v20 = vld [vmem:[#allocation7 + $0x68] sm:$0xff]  ;;  %v1299_v21 = vpack.c.bf16 %v853_v23, %v845_v13  ;;  %v847_v28 = vld [vmem:[#allocation7 + $0x20] sm:$0xff] }
 0x4d0   :  { %v737_v38 = vsel %vm103_vm0, %v687_v33, 0.0  ;;  %v1301_v4 = vpack.c.bf16 %v856_v20, %v848_v19  ;;  %v1303_v55 = vpack.c.bf16 %v855_v30, %v847_v28  ;;  %v864_v33 = vrot.slane %v859_v32, %v1609_v11 }
 0x4d1   :  { %v733_v39 = vrot.slane %v732_v36, 2  ;;  %v738_v41 = vrot.slane %v737_v38, 4  ;;  %v728_v47 = vrot.slane %v727_v35, 1  ;;  %v765_v43 = vsel %vm428_vm4, %v715_v46, %v764_v57 }
 0x4d2   :  { %v766_v60 = vsel %vm430_vm5, %v722_v40, %v765_v43  ;;  %v888_v34 = vrot.slane %v859_v32, %v1706_v26 }
 0x4d3   :  { %v734_v50 = vadd.f32 %v733_v39, %v732_v36  ;;  %v739_v51 = vadd.f32 %v738_v41, %v737_v38  ;;  %v729_v6 = vadd.f32 %v728_v47, %v727_v35  ;;  %v868_v35 = vrot.slane %v859_v32, %v1606_v10 }
 0x4d4   :  { %v892_v36 = vrot.slane %v859_v32, %v1703_v24  ;;  %v876_v47 = vrot.slane %v859_v32, %v1639_v22  ;;  %v880_v24 = vrot.slane %v859_v32, %v1623_v17 }
 0x4d5   :  { %v735_v56 = vrot.slane %v734_v50, 1  ;;  %v740_v31 = vrot.slane %v739_v51, 2  ;;  %v767_v48 = vsel %vm432_vm6, %v729_v6, %v766_v60 }
 0x4d7   :  { %v741_v59 = vadd.f32 %v740_v31, %v739_v51  ;;  %v736_v14 = vadd.f32 %v735_v56, %v734_v50  ;;  %v884_v51 = vrot.slane %v859_v32, %v1660_v27 }
 0x4d9   :  { %v742_v16 = vrot.slane %v741_v59, 1  ;;  %v768_v25 = vsel %vm434_vm7, %v736_v14, %v767_v48 }
 0x4db   :  { %v743_v45 = vadd.f32 %v742_v16, %v741_v59 }
 0x4dd   :  { %v769_v62 = vsel %vm436_vm8, %v743_v45, %v768_v25 }
 0x4de   :  { %1277 = vmatmul.mubr.msk.f32.vlgmr.msra.gmra.mrb[0].mxu1 %vm103_vm0, %v769_v62 }
 0x4df   :  { %969 = vmatprep.mubr.f32.mxu1 %v1482_v12  ;;  %1296 = vmatpush1.bf16.msra.mxu1 %v1295_v58 }
 0x4e0   :  { %1298 = vmatprep.subr.bf16.mxu1 %v1297_v8 }
 0x5b1   :  { %v838_v61 = vpop.f32.mrb[0].mxu1 }
 0x5b2   :  { %v839_v63 = vadd.f32 %v1225_v9, %v838_v61  ;;  %v1278_v2 = vpop.f32.mrb[1].mxu1 }
 0x5b4   :  { %v842_v53 = vmax.f32 %v839_v63, 0.0 }
 0x5b6   :  { %1227 = vmatmul.mubr.msk.f32.vlgmr.msra.gmra.mrb[2].mxu1 %vm901_vm11, %v842_v53  ;;  %1230 = vmatmul.mubr.msk.f32.vlgmr.msra.gmra.mrb[8].mxu0 %vm901_vm11, %v842_v53 }
 0x5b7   :  { %1300 = vmatpush1.bf16.msra.mxu1 %v1299_v21  ;;  %1040 = vmatprep.mubr.f32.mxu1 %v1482_v12 }
 0x5b8   :  { %1302 = vmatprep.subr.bf16.mxu1 %v1301_v4 }
 0x5ba   :  { %1228 = vmatmul.mubr.msk.f32.vlgmr.msra.gmra.mrb[4].mxu1 %vm901_vm11, %v842_v53 }
 0x5bb   :  { %1304 = vmatpush1.bf16.msra.mxu1 %v1303_v55  ;;  %1111 = vmatprep.mubr.f32.mxu1 %v1482_v12 }
 0x5be   :  { %1229 = vmatmul.mubr.msk.f32.vlgmr.msra.gmra.mrb[6].mxu1 %vm901_vm11, %v842_v53 }
 0x689   :  { %v971_v37 = vpop.f32.mrb[2].mxu1  ;;  %v1184_v38 = vpop.f32.mrb[8].mxu0 }
 0x68a   :  { %v972_v29 = vadd.f32 %v971_v37, %v864_v33  ;;  %v1185_v39 = vadd.f32 %v1184_v38, %v888_v34  ;;  %v973_v41 = vpop.f32.mrb[3].mxu1  ;;  %v1186_v42 = vpop.f32.mrb[9].mxu0 }
 0x68b   :  { %v974_v46 = vadd.f32 %v973_v41, %v868_v35  ;;  %v1187_v12 = vadd.f32 %v1186_v42, %v892_v36 }
 0x68c   :  { %1189 = vst [vmem:[#allocation10] sm:$0xff] %v972_v29  ;;  %1195 = vst [vmem:[#allocation10 + $0x30] sm:$0xff] %v1185_v39 }
 0x68d   :  { %1190 = vst [vmem:[#allocation10 + $0x8] sm:$0xff] %v974_v46  ;;  %1196 = vst [vmem:[#allocation10 + $0x38] sm:$0xff] %v1187_v12  ;;  %v1042_v11 = vpop.f32.mrb[4].mxu1 }
 0x68e   :  { %v1043_v10 = vadd.f32 %v1042_v11, %v872_v44  ;;  %v1044_v26 = vpop.f32.mrb[5].mxu1 }
 0x68f   :  { %v1045_v50 = vadd.f32 %v1044_v26, %v876_v47 }
 0x690   :  { %1191 = vst [vmem:[#allocation10 + $0x10] sm:$0xff] %v1043_v10 }
 0x691   :  { %1192 = vst [vmem:[#allocation10 + $0x18] sm:$0xff] %v1045_v50  ;;  %v1113_v15 = vpop.f32.mrb[6].mxu1 }
 0x692   :  { %v1114_v52 = vadd.f32 %v1113_v15, %v880_v24  ;;  %v1115_v54 = vpop.f32.mrb[7].mxu1 }
 0x693   :  { %v1116_v22 = vadd.f32 %v1115_v54, %v884_v51 }
 0x694   :  { %1193 = vst [vmem:[#allocation10 + $0x20] sm:$0xff] %v1114_v52 }
 0x695   :  { %1194 = vst [vmem:[#allocation10 + $0x28] sm:$0xff] %v1116_v22 }
 0x696   :  { %1455 = shalt.err (!%p1452_p8)
}
 0x697   :  { %s1456_s21 = scalar_lea.hbm %s1885_s9, 1024 }
 0x698   :  { %p1457_p9 = scmp.ne.s32.totalorder %s1885_s9, %s1456_s21  ;;  %p1460_p10 = scmp.lt.u32.totalorder %s1456_s21, %s1885_s9 }
 0x69a   :  { %p1462_p11 = pnand %p1460_p10, %p1457_p9 }
 0x69c   :  { %1465 = shalt.err (!%p1462_p11)
}
 0x69d   :  { %1206 = dma.vmem_to_hbm [thread:$0]  %s1204_s18, 1024, %s1885_s9, [#allocation4]  }
 0x69e   :  { %1472 = dma.done.wait [#allocation4], 1024  }
 0x69f   :  { %1473 = vsyncadd [#allocation4], 4294966272 }
 0x6a0   :  { %1210 = vsyncpa [#allocation3], 1 }
 0x6a1   :  { %1211 = vsyncpa [#allocation6], 1 }
 0x6a2   :  { %1212 = vsyncpa [#allocation9], 1 }
 0x6a3   :  { %1213 = vsyncpa [#allocation4], 1 }

</bundles_post_ra>
